<compile_context>
chip_gen: v7x
topology: tpu7x:2x2x1
jax: 0.10.0
libtpu: 0.0.40
codegen_flags: <defaults>
</compile_context>

<pallas_src>
import jax
import jax.numpy as jnp
from jax.experimental import pallas as pl
from jax.experimental.pallas import tpu as pltpu

NEG_SLOPE = 0.01   # nn.LeakyReLU default
COS_EPS = 1e-8     # nn.CosineSimilarity default
EDGE_TILE = 128    # edge-tile width (lane axis)


def _ensemble_edge_kernel(xu_ref, xv_ref, w1t_ref, b1_ref, w2t_ref, b2_ref,
                          sel_ref, out_ref):
    # Transposed layout: edges on lanes, (fused ensemble) features on sublanes.
    w1t = w1t_ref[...]          # [nH, C]   = concat_i w1[i]^T
    b1 = b1_ref[...]            # [nH, 1]
    w2t = w2t_ref[...]          # [nH, nH]  = blockdiag_i w2[i]^T
    b2 = b2_ref[...]            # [nH, 1]
    sel = sel_ref[...]          # [n, nH]   member block indicator

    def mlp_t(xt):              # xt: [C, TE]
        h = jnp.dot(w1t, xt, preferred_element_type=jnp.float32) + b1   # [nH, TE]
        h = jnp.where(h >= 0, h, NEG_SLOPE * h)                          # LeakyReLU
        h = jnp.dot(w2t, h, preferred_element_type=jnp.float32) + b2     # [nH, TE]
        return jnp.tanh(h)

    hu = mlp_t(xu_ref[...])     # [nH, TE]  all n members, stacked on sublanes
    hv = mlp_t(xv_ref[...])     # [nH, TE]

    # Per-member reductions over the H-sized blocks via indicator matmul.
    dot = jnp.dot(sel, hu * hv, preferred_element_type=jnp.float32)   # [n, TE]
    nu2 = jnp.dot(sel, hu * hu, preferred_element_type=jnp.float32)   # [n, TE]
    nv2 = jnp.dot(sel, hv * hv, preferred_element_type=jnp.float32)   # [n, TE]

    # cos = dot / max(|u||v|, eps)  ==  dot * rsqrt(max(|u|^2|v|^2, eps^2))
    cos = dot * jax.lax.rsqrt(jnp.maximum(nu2 * nv2, COS_EPS * COS_EPS))
    res = (1.0 + cos) * 0.5                                            # [n, TE]

    # Mean over ensemble members -> lane-dense [1, TE] output row.
    out_ref[...] = jnp.mean(res, axis=0, keepdims=True)


def ensemble_edge_predictor(x, edge_index, w1, b1, w2, b2):
    """x: [N, C] f32, edge_index: [2, E] int32, w1: [n, C, H], b1: [n, 1, H],
    w2: [n, H, H], b2: [n, 1, H]. Returns [E] f32."""
    N, C = x.shape
    n, _, H = w1.shape
    nH = n * H
    E = edge_index.shape[1]

    # Endpoint gather in the wrapper: gather(MLP(x)) == MLP(gather(x)).
    xu = x[edge_index[0]]                       # [E, C]
    xv = x[edge_index[1]]                       # [E, C]

    # Pad E to a lane multiple and transpose so edges live on the lane axis.
    e_pad = pl.cdiv(E, EDGE_TILE) * EDGE_TILE
    pad = e_pad - E
    xu_t = jnp.pad(xu, ((0, pad), (0, 0))).T    # [C, E_pad]
    xv_t = jnp.pad(xv, ((0, pad), (0, 0))).T    # [C, E_pad]

    # Fuse the ensemble into the feature (sublane) axis.
    w1t = jnp.transpose(w1, (0, 2, 1)).reshape(nH, C)       # concat_i w1[i]^T
    b1c = b1.reshape(nH, 1)
    w2bdt = jnp.zeros((nH, nH), dtype=jnp.float32)
    for i in range(n):                                       # blockdiag_i w2[i]^T
        w2bdt = w2bdt.at[i * H:(i + 1) * H, i * H:(i + 1) * H].set(w2[i].T)
    b2c = b2.reshape(nH, 1)
    sel = jnp.kron(jnp.eye(n, dtype=jnp.float32),
                   jnp.ones((1, H), dtype=jnp.float32))      # [n, nH]

    grid = (e_pad // EDGE_TILE,)
    out = pl.pallas_call(
        _ensemble_edge_kernel,
        out_shape=jax.ShapeDtypeStruct((1, e_pad), jnp.float32),
        grid_spec=pltpu.PrefetchScalarGridSpec(
            num_scalar_prefetch=0,
            grid=grid,
            in_specs=[
                pl.BlockSpec((C, EDGE_TILE), lambda e: (0, e)),   # xu^T tile
                pl.BlockSpec((C, EDGE_TILE), lambda e: (0, e)),   # xv^T tile
                pl.BlockSpec((nH, C), lambda e: (0, 0)),          # W1_all^T (shared)
                pl.BlockSpec((nH, 1), lambda e: (0, 0)),          # b1_all
                pl.BlockSpec((nH, nH), lambda e: (0, 0)),         # blockdiag W2^T
                pl.BlockSpec((nH, 1), lambda e: (0, 0)),          # b2_all
                pl.BlockSpec((n, nH), lambda e: (0, 0)),          # member selector
            ],
            out_specs=pl.BlockSpec((1, EDGE_TILE), lambda e: (0, e)),
        ),
        compiler_params=pltpu.CompilerParams(
            dimension_semantics=("parallel",),          # edge tiles -> both TCs on v7x
            vmem_limit_bytes=32 * 1024 * 1024,          # explicit; fits v7x's 64 MiB
        ),
    )(xu_t, xv_t, w1t, b1c, w2bdt, b2c, sel)
    return out[0, :E]


def _reference(x, edge_index, w1, b1, w2, b2):
    # pure-JAX reference of the ensemble forward
    n = w1.shape[0]
    res = []
    for i in range(n):
        h = x @ w1[i] + b1[i]
        h = jnp.where(h >= 0, h, NEG_SLOPE * h)
        h = jnp.tanh(h @ w2[i] + b2[i])
        hu = h[edge_index[0]]
        hv = h[edge_index[1]]
        dot = jnp.sum(hu * hv, axis=1)
        nu = jnp.sqrt(jnp.sum(hu * hu, axis=1))
        nv = jnp.sqrt(jnp.sum(hv * hv, axis=1))
        cos = dot / jnp.maximum(nu * nv, COS_EPS)
        res.append((1.0 + cos) / 2.0)
    return jnp.mean(jnp.stack(res), axis=0)


if __name__ == "__main__":
    # Small deterministic config: N nodes, C in_channels, H hidden, n predictors, E edges
    N, C, H, n_pred, E = 16, 4, 32, 4, 8

    key = jax.random.PRNGKey(0)
    kx, ke, k1, k2, k3, k4 = jax.random.split(key, 6)

    x = jax.random.normal(kx, (N, C), dtype=jnp.float32)
    edge_index = jax.random.randint(ke, (2, E), 0, N, dtype=jnp.int32)

    # Deterministic synthetic parameters (effective weights already [in, out]).
    w1 = 0.3 * jax.random.normal(k1, (n_pred, C, H), dtype=jnp.float32)
    b1 = 0.1 * jax.random.normal(k2, (n_pred, 1, H), dtype=jnp.float32)
    w2 = 0.3 * jax.random.normal(k3, (n_pred, H, H), dtype=jnp.float32)
    b2 = 0.1 * jax.random.normal(k4, (n_pred, 1, H), dtype=jnp.float32)

    out = ensemble_edge_predictor(x, edge_index, w1, b1, w2, b2)
    out = jax.block_until_ready(out)

    ref = _reference(x, edge_index, w1, b1, w2, b2)
    assert out.shape == (E,)
    assert jnp.max(jnp.abs(out - ref)) < 1e-5

    print("KERNEL_OK")
</pallas_src>

<mosaic_0001>
module attributes {stable_mosaic.version = 11 : i64} {
  func.func @_ensemble_edge_kernel(%arg0: i32, %arg1: memref<4x128xf32, #tpu.memory_space<vmem>>, %arg2: memref<4x128xf32, #tpu.memory_space<vmem>>, %arg3: memref<128x4xf32, #tpu.memory_space<vmem>>, %arg4: memref<128x1xf32, #tpu.memory_space<vmem>>, %arg5: memref<128x128xf32, #tpu.memory_space<vmem>>, %arg6: memref<128x1xf32, #tpu.memory_space<vmem>>, %arg7: memref<4x128xf32, #tpu.memory_space<vmem>>, %arg8: memref<1x128xf32, #tpu.memory_space<vmem>>) attributes {dimension_semantics = [#tpu.dimension_semantics<parallel>], iteration_bounds = array<i64: 1>, scalar_prefetch = 0 : i64, scratch_operands = 0 : i64, tpu.core_type = #tpu.core_type<tc>, window_params = [{transform_indices = @transform_0, window_bounds = array<i64: 4, 128>}, {transform_indices = @transform_1, window_bounds = array<i64: 4, 128>}, {pipeline_mode = #tpu.pipeline_mode<synchronous>, transform_indices = @transform_2, window_bounds = array<i64: 128, 4>}, {pipeline_mode = #tpu.pipeline_mode<synchronous>, transform_indices = @transform_3, window_bounds = array<i64: 128, 1>}, {pipeline_mode = #tpu.pipeline_mode<synchronous>, transform_indices = @transform_4, window_bounds = array<i64: 128, 128>}, {pipeline_mode = #tpu.pipeline_mode<synchronous>, transform_indices = @transform_5, window_bounds = array<i64: 128, 1>}, {pipeline_mode = #tpu.pipeline_mode<synchronous>, transform_indices = @transform_6, window_bounds = array<i64: 4, 128>}, {transform_indices = @transform_7, window_bounds = array<i64: 1, 128>}]} {
    %c0 = arith.constant 0 : index
    %c0_0 = arith.constant 0 : index
    %0 = vector.load %arg3[%c0, %c0_0] : memref<128x4xf32, #tpu.memory_space<vmem>>, vector<128x4xf32>
    %c0_1 = arith.constant 0 : index
    %c0_2 = arith.constant 0 : index
    %1 = vector.load %arg4[%c0_1, %c0_2] : memref<128x1xf32, #tpu.memory_space<vmem>>, vector<128x1xf32>
    %c0_3 = arith.constant 0 : index
    %c0_4 = arith.constant 0 : index
    %2 = vector.load %arg5[%c0_3, %c0_4] : memref<128x128xf32, #tpu.memory_space<vmem>>, vector<128x128xf32>
    %c0_5 = arith.constant 0 : index
    %c0_6 = arith.constant 0 : index
    %3 = vector.load %arg6[%c0_5, %c0_6] : memref<128x1xf32, #tpu.memory_space<vmem>>, vector<128x1xf32>
    %c0_7 = arith.constant 0 : index
    %c0_8 = arith.constant 0 : index
    %4 = vector.load %arg7[%c0_7, %c0_8] : memref<4x128xf32, #tpu.memory_space<vmem>>, vector<4x128xf32>
    %c0_9 = arith.constant 0 : index
    %c0_10 = arith.constant 0 : index
    %5 = vector.load %arg1[%c0_9, %c0_10] : memref<4x128xf32, #tpu.memory_space<vmem>>, vector<4x128xf32>
    %cst = arith.constant dense<0.000000e+00> : vector<128x128xf32>
    %6 = tpu.matmul %0, %5, %cst {dimension_numbers = #tpu.dot_dimension_numbers<[1], [0], [0], [1], [0, 0, 1, 1], [], []>} : vector<128x4xf32>, vector<4x128xf32>, vector<128x128xf32> -> vector<128x128xf32>
    %7 = vector.broadcast %1 : vector<128x1xf32> to vector<128x128xf32>
    %8 = arith.addf %6, %7 : vector<128x128xf32>
    %cst_11 = arith.constant 0.000000e+00 : f32
    %9 = vector.broadcast %cst_11 : f32 to vector<128x128xf32>
    %10 = arith.cmpf oge, %8, %9 : vector<128x128xf32>
    %cst_12 = arith.constant 0.00999999977 : f32
    %11 = vector.broadcast %cst_12 : f32 to vector<128x128xf32>
    %12 = arith.mulf %11, %8 : vector<128x128xf32>
    %13 = arith.select %10, %8, %12 : vector<128x128xi1>, vector<128x128xf32>
    %cst_13 = arith.constant dense<0.000000e+00> : vector<128x128xf32>
    %14 = tpu.matmul %2, %13, %cst_13 {dimension_numbers = #tpu.dot_dimension_numbers<[1], [0], [0], [1], [0, 0, 1, 1], [], []>} : vector<128x128xf32>, vector<128x128xf32>, vector<128x128xf32> -> vector<128x128xf32>
    %15 = vector.broadcast %3 : vector<128x1xf32> to vector<128x128xf32>
    %16 = arith.addf %14, %15 : vector<128x128xf32>
    %17 = math.tanh %16 : vector<128x128xf32>
    %c0_14 = arith.constant 0 : index
    %c0_15 = arith.constant 0 : index
    %18 = vector.load %arg2[%c0_14, %c0_15] : memref<4x128xf32, #tpu.memory_space<vmem>>, vector<4x128xf32>
    %cst_16 = arith.constant dense<0.000000e+00> : vector<128x128xf32>
    %19 = tpu.matmul %0, %18, %cst_16 {dimension_numbers = #tpu.dot_dimension_numbers<[1], [0], [0], [1], [0, 0, 1, 1], [], []>} : vector<128x4xf32>, vector<4x128xf32>, vector<128x128xf32> -> vector<128x128xf32>
    %20 = vector.broadcast %1 : vector<128x1xf32> to vector<128x128xf32>
    %21 = arith.addf %19, %20 : vector<128x128xf32>
    %cst_17 = arith.constant 0.000000e+00 : f32
    %22 = vector.broadcast %cst_17 : f32 to vector<128x128xf32>
    %23 = arith.cmpf oge, %21, %22 : vector<128x128xf32>
    %cst_18 = arith.constant 0.00999999977 : f32
    %24 = vector.broadcast %cst_18 : f32 to vector<128x128xf32>
    %25 = arith.mulf %24, %21 : vector<128x128xf32>
    %26 = arith.select %23, %21, %25 : vector<128x128xi1>, vector<128x128xf32>
    %cst_19 = arith.constant dense<0.000000e+00> : vector<128x128xf32>
    %27 = tpu.matmul %2, %26, %cst_19 {dimension_numbers = #tpu.dot_dimension_numbers<[1], [0], [0], [1], [0, 0, 1, 1], [], []>} : vector<128x128xf32>, vector<128x128xf32>, vector<128x128xf32> -> vector<128x128xf32>
    %28 = vector.broadcast %3 : vector<128x1xf32> to vector<128x128xf32>
    %29 = arith.addf %27, %28 : vector<128x128xf32>
    %30 = math.tanh %29 : vector<128x128xf32>
    %31 = arith.mulf %17, %30 : vector<128x128xf32>
    %cst_20 = arith.constant dense<0.000000e+00> : vector<4x128xf32>
    %32 = tpu.matmul %4, %31, %cst_20 {dimension_numbers = #tpu.dot_dimension_numbers<[1], [0], [0], [1], [0, 0, 1, 1], [], []>} : vector<4x128xf32>, vector<128x128xf32>, vector<4x128xf32> -> vector<4x128xf32>
    %33 = arith.mulf %17, %17 : vector<128x128xf32>
    %cst_21 = arith.constant dense<0.000000e+00> : vector<4x128xf32>
    %34 = tpu.matmul %4, %33, %cst_21 {dimension_numbers = #tpu.dot_dimension_numbers<[1], [0], [0], [1], [0, 0, 1, 1], [], []>} : vector<4x128xf32>, vector<128x128xf32>, vector<4x128xf32> -> vector<4x128xf32>
    %35 = arith.mulf %30, %30 : vector<128x128xf32>
    %cst_22 = arith.constant dense<0.000000e+00> : vector<4x128xf32>
    %36 = tpu.matmul %4, %35, %cst_22 {dimension_numbers = #tpu.dot_dimension_numbers<[1], [0], [0], [1], [0, 0, 1, 1], [], []>} : vector<4x128xf32>, vector<128x128xf32>, vector<4x128xf32> -> vector<4x128xf32>
    %37 = arith.mulf %34, %36 : vector<4x128xf32>
    %cst_23 = arith.constant 1.000000e-16 : f32
    %38 = vector.broadcast %cst_23 : f32 to vector<4x128xf32>
    %39 = arith.maximumf %37, %38 : vector<4x128xf32>
    %40 = math.rsqrt %39 : vector<4x128xf32>
    %41 = arith.mulf %32, %40 : vector<4x128xf32>
    %cst_24 = arith.constant 1.000000e+00 : f32
    %42 = vector.broadcast %cst_24 : f32 to vector<4x128xf32>
    %43 = arith.addf %42, %41 : vector<4x128xf32>
    %cst_25 = arith.constant 5.000000e-01 : f32
    %44 = vector.broadcast %cst_25 : f32 to vector<4x128xf32>
    %45 = arith.mulf %43, %44 : vector<4x128xf32>
    %cst_26 = arith.constant dense<0.000000e+00> : vector<128xf32>
    %46 = vector.multi_reduction <add>, %45, %cst_26 [0] : vector<4x128xf32> to vector<128xf32>
    %47 = vector.shape_cast %46 : vector<128xf32> to vector<1x128xf32>
    %cst_27 = arith.constant 4.000000e+00 : f32
    %48 = vector.broadcast %cst_27 : f32 to vector<1x128xf32>
    %49 = arith.divf %47, %48 : vector<1x128xf32>
    %c0_28 = arith.constant 0 : index
    %c0_29 = arith.constant 0 : index
    %50 = vector.load %arg8[%c0_28, %c0_29] : memref<1x128xf32, #tpu.memory_space<vmem>>, vector<1x128xf32>
    tpu.vector_store %arg8[%c0_28, %c0_29], %49 {strides = array<i32>} : memref<1x128xf32, #tpu.memory_space<vmem>>, vector<1x128xf32>,
    return
  }
  func.func @transform_0(%arg0: i32) -> (i32, i32) {
    %c0_i32 = arith.constant 0 : i32
    %c0_i32_0 = arith.constant 0 : i32
    return %c0_i32, %arg0 : i32, i32
  }
  func.func @transform_1(%arg0: i32) -> (i32, i32) {
    %c0_i32 = arith.constant 0 : i32
    %c0_i32_0 = arith.constant 0 : i32
    return %c0_i32, %arg0 : i32, i32
  }
  func.func @transform_2(%arg0: i32) -> (i32, i32) {
    %c0_i32 = arith.constant 0 : i32
    %c0_i32_0 = arith.constant 0 : i32
    %c0_i32_1 = arith.constant 0 : i32
    return %c0_i32, %c0_i32_0 : i32, i32
  }
  func.func @transform_3(%arg0: i32) -> (i32, i32) {
    %c0_i32 = arith.constant 0 : i32
    %c0_i32_0 = arith.constant 0 : i32
    %c0_i32_1 = arith.constant 0 : i32
    return %c0_i32, %c0_i32_0 : i32, i32
  }
  func.func @transform_4(%arg0: i32) -> (i32, i32) {
    %c0_i32 = arith.constant 0 : i32
    %c0_i32_0 = arith.constant 0 : i32
    %c0_i32_1 = arith.constant 0 : i32
    return %c0_i32, %c0_i32_0 : i32, i32
  }
  func.func @transform_5(%arg0: i32) -> (i32, i32) {
    %c0_i32 = arith.constant 0 : i32
    %c0_i32_0 = arith.constant 0 : i32
    %c0_i32_1 = arith.constant 0 : i32
    return %c0_i32, %c0_i32_0 : i32, i32
  }
  func.func @transform_6(%arg0: i32) -> (i32, i32) {
    %c0_i32 = arith.constant 0 : i32
    %c0_i32_0 = arith.constant 0 : i32
    %c0_i32_1 = arith.constant 0 : i32
    return %c0_i32, %c0_i32_0 : i32, i32
  }
  func.func @transform_7(%arg0: i32) -> (i32, i32) {
    %c0_i32 = arith.constant 0 : i32
    %c0_i32_0 = arith.constant 0 : i32
    return %c0_i32, %arg0 : i32, i32
  }
}

</mosaic_0001>

<bundles_post_ra>
// kernel: tpu_custom_call.1
= control target key start
LH: loop header
LB: loop body
LE: loop exit
PB: predicated region body
PF: predicated region fallthrough
CT: control target
= control target key end

     0   :  { %vm222_vm0 = vcmask 1043456   ;;  %vm173_vm1 = vcmask 31744   ;;  %v1991_v5 = vmov 0   ;;  %s2623_s0 = inlined_call_operand.vmem [shape: f32[4,128], index: 0, kind: input, shape index: {}]   ;;  %s2624_s1 = inlined_call_operand.vmem [shape: f32[4,128], index: 1, kind: input, shape index: {}]   ;;  %s2625_s2 = inlined_call_operand.vmem [shape: f32[128,4], index: 2, kind: input, shape index: {}]   ;;  %s2626_s3 = inlined_call_operand.vmem [shape: f32[128,1], index: 3, kind: input, shape index: {}]   ;;  %s2627_s4 = inlined_call_operand.vmem [shape: f32[128,128], index: 4, kind: input, shape index: {}]   ;;  %s2628_s5 = inlined_call_operand.vmem [shape: f32[128,1], index: 5, kind: input, shape index: {}]   ;;  %s2629_s6 = inlined_call_operand.vmem [shape: f32[4,128], index: 6, kind: input, shape index: {}]   ;;  %s2630_s7 = inlined_call_operand.hbm [shape: f32[1,128], index: 7, kind: output, shape index: {}]  }
   0x1   :  { %v92_v0 = vld [vmem:[%s2623_s0] sm:$0xf]  ;;  %v2047_v2 = vld [vmem:[%s2625_s2 + $0x8] sm:$0xff]  ;;  %v2058_v4 = vld [vmem:[%s2625_s2 + $0x10] sm:$0xff]  ;;  %1899 = vset.pattern.permute.xlu0 %v1991_v5  ;;  %1900 = vset.pattern.permute.xlu1 %v1991_v5 }
   0x2   :  { %v2042_v1 = vld [vmem:[%s2625_s2] sm:$0xff]  ;;  %1489 = vmatprep.subr.msk.mxu0 %vm222_vm0, %v92_v0  ;;  %v2070_v6 = vld [vmem:[%s2625_s2 + $0x18] sm:$0xff]  ;;  %v45_v9 = vld [vmem:[%s2626_s3 + $0x10] sm:$0xff] }
   0x3   :  { %1491 = vmatprep.mubr.msk.f32.mxu0 %vm173_vm1, %v2042_v1  ;;  %v660_v3 = vld [vmem:[%s2624_s1] sm:$0xf]  ;;  %1490 = vmatpush3.msk.msra.mxu0 %vm222_vm0, %v92_v0  ;;  %v44_v10 = vld [vmem:[%s2626_s3 + $0x8] sm:$0xff]  ;;  %v46_v11 = vld [vmem:[%s2626_s3 + $0x18] sm:$0xff] }
   0x4   :  { %1492 = vmatmul.mubr.msk.f32.vlgmr.msra.gmra.mrb[0].mxu0 %vm173_vm1, %v2047_v2  ;;  %1571 = vmatprep.subr.msk.mxu0 %vm222_vm0, %v660_v3  ;;  %v43_v7 = vld [vmem:[%s2626_s3] sm:$0xff]  ;;  %v2096_v12 = vld [vmem:[%s2625_s2 + $0x28] sm:$0xff]  ;;  %v2101_v13 = vld [vmem:[%s2625_s2 + $0x30] sm:$0xff] }
   0x5   :  { %1572 = vmatpush3.msk.msra.mxu0 %vm222_vm0, %v660_v3  ;;  %1494 = vmatprep.mubr.msk.f32.mxu0 %vm173_vm1, %v2058_v4  ;;  %v2078_v8 = vld [vmem:[%s2625_s2 + $0x20] sm:$0xff]  ;;  %v48_v15 = vld [vmem:[%s2626_s3 + $0x28] sm:$0xff]  ;;  %v34_v16 = vld [vmem:[%s2625_s2 + $0x38] sm:$0xff] }
   0x6   :  { %95 = vperm.xlu0 %1899, %v43_v7   ;;  %105 = vperm.xlu1 %1900, %v45_v9   ;;  %v47_v14 = vld [vmem:[%s2626_s3 + $0x20] sm:$0xff]  ;;  %v49_v18 = vld [vmem:[%s2626_s3 + $0x30] sm:$0xff]  ;;  %v50_v19 = vld [vmem:[%s2626_s3 + $0x38] sm:$0xff] }
   0x7   :  { %v35_v17 = vld [vmem:[%s2625_s2 + $0x40] sm:$0xff]  ;;  %v36_v20 = vld [vmem:[%s2625_s2 + $0x48] sm:$0xff] }
   0x8   :  { %1495 = vmatmul.mubr.msk.f32.gmra.mrb[2].mxu0 %vm173_vm1, %v2070_v6 }
   0x9   :  { %1497 = vmatprep.mubr.msk.f32.mxu0 %vm173_vm1, %v2078_v8 }
   0xa   :  { %100 = vperm.xlu0 %1899, %v44_v10   ;;  %110 = vperm.xlu1 %1900, %v46_v11  }
   0xc   :  { %1498 = vmatmul.mubr.msk.f32.gmra.mrb[4].mxu0 %vm173_vm1, %v2096_v12 }
   0xd   :  { %1500 = vmatprep.mubr.msk.f32.mxu0 %vm173_vm1, %v2101_v13 }
   0xe   :  { %115 = vperm.xlu0 %1899, %v47_v14   ;;  %120 = vperm.xlu1 %1900, %v48_v15  }
  0x10   :  { %1501 = vmatmul.mubr.msk.f32.gmra.mrb[6].mxu0 %vm173_vm1, %v34_v16 }
  0x11   :  { %1503 = vmatprep.mubr.msk.f32.mxu0 %vm173_vm1, %v35_v17 }
  0x12   :  { %12 = vsyncpa [#allocation3], 0  ;;  %v37_v21 = vld [vmem:[%s2625_s2 + $0x50] sm:$0xff]  ;;  %125 = vperm.xlu0 %1899, %v49_v18   ;;  %130 = vperm.xlu1 %1900, %v50_v19   ;;  %v51_v22 = vld [vmem:[%s2626_s3 + $0x40] sm:$0xff] }
  0x13   :  { %v52_v23 = vld [vmem:[%s2626_s3 + $0x48] sm:$0xff]  ;;  %v38_v24 = vld [vmem:[%s2625_s2 + $0x58] sm:$0xff]  ;;  %v39_v25 = vld [vmem:[%s2625_s2 + $0x60] sm:$0xff] }
  0x14   :  { %1504 = vmatmul.mubr.msk.f32.gmra.mrb[8].mxu0 %vm173_vm1, %v36_v20  ;;  %v53_v26 = vld [vmem:[%s2626_s3 + $0x50] sm:$0xff]  ;;  %v54_v27 = vld [vmem:[%s2626_s3 + $0x58] sm:$0xff]  ;;  %v40_v28 = vld [vmem:[%s2625_s2 + $0x68] sm:$0xff] }
  0x15   :  { %1506 = vmatprep.mubr.msk.f32.mxu0 %vm173_vm1, %v37_v21  ;;  %v41_v29 = vld [vmem:[%s2625_s2 + $0x70] sm:$0xff]  ;;  %v55_v30 = vld [vmem:[%s2626_s3 + $0x60] sm:$0xff]  ;;  %v56_v31 = vld [vmem:[%s2626_s3 + $0x68] sm:$0xff] }
  0x16   :  { %135 = vperm.xlu0 %1899, %v51_v22   ;;  %140 = vperm.xlu1 %1900, %v52_v23   ;;  %v42_v32 = vld [vmem:[%s2625_s2 + $0x78] sm:$0xff]  ;;  %v57_v33 = vld [vmem:[%s2626_s3 + $0x70] sm:$0xff]  ;;  %v75_v35 = vld [vmem:[%s2628_s5] sm:$0xff] }
  0x17   :  { %v58_v34 = vld [vmem:[%s2626_s3 + $0x78] sm:$0xff]  ;;  %v76_v36 = vld [vmem:[%s2628_s5 + $0x8] sm:$0xff]  ;;  %v77_v37 = vld [vmem:[%s2628_s5 + $0x10] sm:$0xff] }
  0x18   :  { %1507 = vmatmul.mubr.msk.f32.gmra.mrb[10].mxu0 %vm173_vm1, %v38_v24  ;;  %v78_v38 = vld [vmem:[%s2628_s5 + $0x18] sm:$0xff]  ;;  %v79_v39 = vld [vmem:[%s2628_s5 + $0x20] sm:$0xff]  ;;  %v80_v40 = vld [vmem:[%s2628_s5 + $0x28] sm:$0xff] }
  0x19   :  { %1509 = vmatprep.mubr.msk.f32.mxu0 %vm173_vm1, %v39_v25  ;;  %v81_v41 = vld [vmem:[%s2628_s5 + $0x30] sm:$0xff]  ;;  %v82_v42 = vld [vmem:[%s2628_s5 + $0x38] sm:$0xff]  ;;  %v83_v43 = vld [vmem:[%s2628_s5 + $0x40] sm:$0xff] }
  0x1a   :  { %145 = vperm.xlu0 %1899, %v53_v26   ;;  %150 = vperm.xlu1 %1900, %v54_v27   ;;  %v84_v44 = vld [vmem:[%s2628_s5 + $0x48] sm:$0xff]  ;;  %v85_v45 = vld [vmem:[%s2628_s5 + $0x50] sm:$0xff]  ;;  %v86_v46 = vld [vmem:[%s2628_s5 + $0x58] sm:$0xff] }
  0x1b   :  { %v87_v47 = vld [vmem:[%s2628_s5 + $0x60] sm:$0xff]  ;;  %v88_v48 = vld [vmem:[%s2628_s5 + $0x68] sm:$0xff]  ;;  %v89_v49 = vld [vmem:[%s2628_s5 + $0x70] sm:$0xff] }
  0x1c   :  { %1510 = vmatmul.mubr.msk.f32.gmra.mrb[12].mxu0 %vm173_vm1, %v40_v28  ;;  %v90_v50 = vld [vmem:[%s2628_s5 + $0x78] sm:$0xff]  ;;  %v2253_v51 = vld [vmem:[%s2627_s4] sm:$0xff] }
  0x1d   :  { %1512 = vmatprep.mubr.msk.f32.mxu0 %vm173_vm1, %v41_v29  ;;  %1547 = vmatprep.mubr.f32.mxu1 %v2253_v51 }
  0x1e   :  { %155 = vperm.xlu0 %1899, %v55_v30   ;;  %160 = vperm.xlu1 %1900, %v56_v31  }
  0x20   :  { %1513 = vmatmul.mubr.msk.f32.gmra.mrb[14].mxu0 %vm173_vm1, %v42_v32 }
  0x21   :  { %1573 = vmatprep.mubr.msk.f32.mxu0 %vm173_vm1, %v2042_v1 }
  0x22   :  { %165 = vperm.xlu0 %1899, %v57_v33   ;;  %170 = vperm.xlu1 %1900, %v58_v34  }
  0x24   :  { %1574 = vmatmul.mubr.msk.f32.vlgmr.msra.gmra.mrb[16].mxu0 %vm173_vm1, %v2047_v2 }
  0x25   :  { %1576 = vmatprep.mubr.msk.f32.mxu0 %vm173_vm1, %v2058_v4 }
  0x26   :  { %421 = vperm.xlu0 %1899, %v75_v35   ;;  %426 = vperm.xlu1 %1900, %v76_v36  }
  0x28   :  { %1577 = vmatmul.mubr.msk.f32.gmra.mrb[18].mxu0 %vm173_vm1, %v2070_v6 }
  0x29   :  { %1579 = vmatprep.mubr.msk.f32.mxu0 %vm173_vm1, %v2078_v8 }
  0x2a   :  { %431 = vperm.xlu0 %1899, %v77_v37   ;;  %436 = vperm.xlu1 %1900, %v78_v38  }
  0x2c   :  { %1580 = vmatmul.mubr.msk.f32.gmra.mrb[20].mxu0 %vm173_vm1, %v2096_v12 }
  0x2d   :  { %1582 = vmatprep.mubr.msk.f32.mxu0 %vm173_vm1, %v2101_v13 }
  0x2e   :  { %441 = vperm.xlu0 %1899, %v79_v39   ;;  %446 = vperm.xlu1 %1900, %v80_v40  }
  0x30   :  { %1583 = vmatmul.mubr.msk.f32.gmra.mrb[22].mxu0 %vm173_vm1, %v34_v16 }
  0x31   :  { %1585 = vmatprep.mubr.msk.f32.mxu0 %vm173_vm1, %v35_v17 }
  0x32   :  { %451 = vperm.xlu0 %1899, %v81_v41   ;;  %456 = vperm.xlu1 %1900, %v82_v42  }
  0x34   :  { %1586 = vmatmul.mubr.msk.f32.gmra.mrb[24].mxu0 %vm173_vm1, %v36_v20 }
  0x35   :  { %1588 = vmatprep.mubr.msk.f32.mxu0 %vm173_vm1, %v37_v21 }
  0x36   :  { %461 = vperm.xlu0 %1899, %v83_v43   ;;  %466 = vperm.xlu1 %1900, %v84_v44  }
  0x38   :  { %1589 = vmatmul.mubr.msk.f32.gmra.mrb[26].mxu0 %vm173_vm1, %v38_v24 }
  0x39   :  { %1591 = vmatprep.mubr.msk.f32.mxu0 %vm173_vm1, %v39_v25 }
  0x3a   :  { %471 = vperm.xlu0 %1899, %v85_v45   ;;  %476 = vperm.xlu1 %1900, %v86_v46  }
  0x3c   :  { %1592 = vmatmul.mubr.msk.f32.gmra.mrb[28].mxu0 %vm173_vm1, %v40_v28 }
  0x3d   :  { %1594 = vmatprep.mubr.msk.f32.mxu0 %vm173_vm1, %v41_v29 }
  0x3e   :  { %481 = vperm.xlu0 %1899, %v87_v47   ;;  %486 = vperm.xlu1 %1900, %v88_v48  }
  0x40   :  { %1595 = vmatmul.mubr.msk.f32.gmra.mrb[30].mxu0 %vm173_vm1, %v42_v32 }
  0x42   :  { %491 = vperm.xlu0 %1899, %v89_v49   ;;  %496 = vperm.xlu1 %1900, %v90_v50  }
  0x85   :  { %v2256_v52 = vpop.permute.xlu1 %105  ;;  %v2258_v53 = vpop.permute.xlu0 %95 }
  0x89   :  { %v2260_v54 = vpop.permute.xlu1 %110  ;;  %v2262_v55 = vpop.permute.xlu0 %100 }
  0x8d   :  { %v2264_v56 = vpop.permute.xlu1 %120  ;;  %v2266_v57 = vpop.permute.xlu0 %115 }
  0x91   :  { %v2270_v63 = vpop.permute.xlu1 %130  ;;  %v2272_v2 = vpop.permute.xlu0 %125 }
  0x95   :  { %v2277_v15 = vpop.permute.xlu1 %140  ;;  %v2280_v18 = vpop.permute.xlu0 %135 }
  0x99   :  { %v2284_v30 = vpop.permute.xlu1 %150  ;;  %v2286_v33 = vpop.permute.xlu0 %145 }
  0x9d   :  { %v2291_v46 = vpop.permute.xlu1 %160  ;;  %v2294_v49 = vpop.permute.xlu0 %155 }
  0xd7   :  { %v1493_v58 = vpop.f32.mrb[0].mxu0 }
  0xd8   :  { %v298_v59 = vadd.f32 %v1493_v58, %v2262_v55  ;;  %v292_v60 = vpop.f32.mrb[1].mxu0 }
  0xd9   :  { %v293_v61 = vadd.f32 %v292_v60, %v2258_v53 }
  0xda   :  { %v388_v62 = vmul.f32 0.01, %v298_v59  ;;  %vm372_vm2 = vcmp.ge.f32.partialorder %v298_v59, 0.0 }
  0xdb   :  { %v387_v0 = vmul.f32 0.01, %v293_v61  ;;  %v1496_v1 = vpop.f32.mrb[2].mxu0  ;;  %vm371_vm3 = vcmp.ge.f32.partialorder %v293_v61, 0.0 }
  0xdc   :  { %v308_v3 = vadd.f32 %v1496_v1, %v2260_v54  ;;  %v302_v4 = vpop.f32.mrb[3].mxu0  ;;  %v404_v5 = vsel %vm372_vm2, %v298_v59, %v388_v62 }
  0xdd   :  { %v303_v6 = vadd.f32 %v302_v4, %v2256_v52  ;;  %v403_v7 = vsel %vm371_vm3, %v293_v61, %v387_v0 }
  0xde   :  { %vm374_vm4 = vcmp.ge.f32.partialorder %v308_v3, 0.0  ;;  %v390_v8 = vmul.f32 0.01, %v308_v3  ;;  %v1758_v9 = vpack.c.bf16 %v404_v5, %v403_v7 }
  0xdf   :  { %vm373_vm5 = vcmp.ge.f32.partialorder %v303_v6, 0.0  ;;  %v389_v10 = vmul.f32 0.01, %v303_v6  ;;  %v1499_v11 = vpop.f32.mrb[4].mxu0 }
  0xe0   :  { %v318_v12 = vadd.f32 %v1499_v11, %v2264_v56  ;;  %v312_v13 = vpop.f32.mrb[5].mxu0  ;;  %1759 = vmatprep.subr.bf16.mxu1 %v1758_v9  ;;  %v406_v14 = vsel %vm374_vm4, %v308_v3, %v390_v8 }
  0xe1   :  { %v313_v16 = vadd.f32 %v312_v13, %v2266_v57  ;;  %1761 = vmatpush3.bf16.msra.mxu1 %v1758_v9  ;;  %v405_v17 = vsel %vm373_vm5, %v303_v6, %v389_v10  ;;  %v2298_v6 = vpop.permute.xlu1 %170  ;;  %v2300_v9 = vpop.permute.xlu0 %165 }
  0xe2   :  { %vm376_vm6 = vcmp.ge.f32.partialorder %v318_v12, 0.0  ;;  %v392_v19 = vmul.f32 0.01, %v318_v12  ;;  %v1762_v20 = vpack.c.bf16 %v406_v14, %v405_v17 }
  0xe3   :  { %vm375_vm7 = vcmp.ge.f32.partialorder %v313_v16, 0.0  ;;  %v391_v21 = vmul.f32 0.01, %v313_v16  ;;  %v1502_v22 = vpop.f32.mrb[6].mxu0 }
  0xe4   :  { %v328_v23 = vadd.f32 %v1502_v22, %v2270_v63  ;;  %v322_v24 = vpop.f32.mrb[7].mxu0  ;;  %1763 = vmatprep.subr.bf16.mxu1 %v1762_v20  ;;  %v408_v25 = vsel %vm376_vm6, %v318_v12, %v392_v19 }
  0xe5   :  { %v323_v26 = vadd.f32 %v322_v24, %v2272_v2  ;;  %1765 = vmatpush3.bf16.msra.mxu1 %v1762_v20  ;;  %v407_v27 = vsel %vm375_vm7, %v313_v16, %v391_v21 }
  0xe6   :  { %vm378_vm8 = vcmp.ge.f32.partialorder %v328_v23, 0.0  ;;  %v394_v28 = vmul.f32 0.01, %v328_v23  ;;  %v1766_v29 = vpack.c.bf16 %v408_v25, %v407_v27 }
  0xe7   :  { %vm377_vm9 = vcmp.ge.f32.partialorder %v323_v26, 0.0  ;;  %v393_v31 = vmul.f32 0.01, %v323_v26  ;;  %v1505_v32 = vpop.f32.mrb[8].mxu0 }
  0xe8   :  { %v338_v34 = vadd.f32 %v1505_v32, %v2277_v15  ;;  %v332_v35 = vpop.f32.mrb[9].mxu0  ;;  %1767 = vmatprep.subr.bf16.mxu1 %v1766_v29  ;;  %v410_v36 = vsel %vm378_vm8, %v328_v23, %v394_v28 }
  0xe9   :  { %v333_v37 = vadd.f32 %v332_v35, %v2280_v18  ;;  %1769 = vmatpush3.bf16.msra.mxu1 %v1766_v29  ;;  %v409_v38 = vsel %vm377_vm9, %v323_v26, %v393_v31 }
  0xea   :  { %vm380_vm10 = vcmp.ge.f32.partialorder %v338_v34, 0.0  ;;  %v396_v39 = vmul.f32 0.01, %v338_v34  ;;  %v1770_v40 = vpack.c.bf16 %v410_v36, %v409_v38  ;;  %v2316_v38 = vld [vmem:[%s2627_s4 + $0x10] sm:$0xff] }
  0xeb   :  { %vm379_vm11 = vcmp.ge.f32.partialorder %v333_v37, 0.0  ;;  %v395_v41 = vmul.f32 0.01, %v333_v37  ;;  %v1508_v42 = vpop.f32.mrb[10].mxu0 }
  0xec   :  { %v348_v43 = vadd.f32 %v1508_v42, %v2284_v30  ;;  %v342_v44 = vpop.f32.mrb[11].mxu0  ;;  %1771 = vmatprep.subr.bf16.mxu1 %v1770_v40  ;;  %v412_v45 = vsel %vm380_vm10, %v338_v34, %v396_v39 }
  0xed   :  { %v343_v47 = vadd.f32 %v342_v44, %v2286_v33  ;;  %1773 = vmatpush3.bf16.msra.mxu1 %v1770_v40  ;;  %v411_v48 = vsel %vm379_vm11, %v333_v37, %v395_v41 }
  0xee   :  { %vm382_vm12 = vcmp.ge.f32.partialorder %v348_v43, 0.0  ;;  %v398_v50 = vmul.f32 0.01, %v348_v43  ;;  %v1774_v58 = vpack.c.bf16 %v412_v45, %v411_v48 }
  0xef   :  { %vm381_vm13 = vcmp.ge.f32.partialorder %v343_v47, 0.0  ;;  %v397_v59 = vmul.f32 0.01, %v343_v47  ;;  %v1511_v60 = vpop.f32.mrb[12].mxu0 }
  0xf0   :  { %v358_v61 = vadd.f32 %v1511_v60, %v2291_v46  ;;  %v352_v62 = vpop.f32.mrb[13].mxu0  ;;  %1775 = vmatprep.subr.bf16.mxu1 %v1774_v58  ;;  %v414_v0 = vsel %vm382_vm12, %v348_v43, %v398_v50  ;;  %v2325_v43 = vld [vmem:[%s2627_s4 + $0x18] sm:$0xff] }
  0xf1   :  { %v353_v1 = vadd.f32 %v352_v62, %v2294_v49  ;;  %1777 = vmatpush3.bf16.msra.mxu1 %v1774_v58  ;;  %v413_v3 = vsel %vm381_vm13, %v343_v47, %v397_v59 }
  0xf2   :  { %vm384_vm14 = vcmp.ge.f32.partialorder %v358_v61, 0.0  ;;  %v400_v4 = vmul.f32 0.01, %v358_v61  ;;  %v1778_v5 = vpack.c.bf16 %v414_v0, %v413_v3 }
  0xf3   :  { %vm383_vm15 = vcmp.ge.f32.partialorder %v353_v1, 0.0  ;;  %v399_v7 = vmul.f32 0.01, %v353_v1  ;;  %v1514_v8 = vpop.f32.mrb[14].mxu0 }
  0xf4   :  { %v368_v10 = vadd.f32 %v1514_v8, %v2298_v6  ;;  %v362_v11 = vpop.f32.mrb[15].mxu0  ;;  %1779 = vmatprep.subr.bf16.mxu1 %v1778_v5  ;;  %v416_v12 = vsel %vm384_vm14, %v358_v61, %v400_v4  ;;  %v2339_v61 = vld [vmem:[%s2627_s4 + $0x28] sm:$0xff] }
  0xf5   :  { %v363_v13 = vadd.f32 %v362_v11, %v2300_v9  ;;  %1781 = vmatpush3.bf16.msra.mxu1 %v1778_v5  ;;  %v415_v14 = vsel %vm383_vm15, %v353_v1, %v399_v7 }
  0xf6   :  { %vm386_vm1 = vcmp.ge.f32.partialorder %v368_v10, 0.0  ;;  %v402_v16 = vmul.f32 0.01, %v368_v10  ;;  %v1782_v17 = vpack.c.bf16 %v416_v12, %v415_v14 }
  0xf7   :  { %vm385_vm2 = vcmp.ge.f32.partialorder %v363_v13, 0.0  ;;  %v401_v19 = vmul.f32 0.01, %v363_v13  ;;  %v1575_v20 = vpop.f32.mrb[16].mxu0 }
  0xf8   :  { %v736_v21 = vadd.f32 %v1575_v20, %v2262_v55  ;;  %1783 = vmatprep.subr.bf16.mxu1 %v1782_v17  ;;  %v730_v22 = vpop.f32.mrb[17].mxu0  ;;  %v418_v23 = vsel %vm386_vm1, %v368_v10, %v402_v16  ;;  %v2353_v10 = vld [vmem:[%s2627_s4 + $0x38] sm:$0xff] }
  0xf9   :  { %v731_v24 = vadd.f32 %v730_v22, %v2258_v53  ;;  %1785 = vmatpush3.bf16.msra.mxu1 %v1782_v17  ;;  %v417_v25 = vsel %vm385_vm2, %v363_v13, %v401_v19  ;;  %v2311_v53 = vld [vmem:[%s2627_s4 + $0x8] sm:$0xff] }
  0xfa   :  { %vm810_vm3 = vcmp.ge.f32.partialorder %v736_v21, 0.0  ;;  %v826_v26 = vmul.f32 0.01, %v736_v21  ;;  %v1786_v27 = vpack.c.bf16 %v418_v23, %v417_v25 }
  0xfb   :  { %vm809_vm4 = vcmp.ge.f32.partialorder %v731_v24, 0.0  ;;  %v825_v28 = vmul.f32 0.01, %v731_v24  ;;  %v1578_v29 = vpop.f32.mrb[18].mxu0 }
  0xfc   :  { %v746_v31 = vadd.f32 %v1578_v29, %v2260_v54  ;;  %1787 = vmatprep.subr.bf16.mxu1 %v1786_v27  ;;  %v740_v32 = vpop.f32.mrb[19].mxu0  ;;  %v842_v34 = vsel %vm810_vm3, %v736_v21, %v826_v26  ;;  %v68_v21 = vld [vmem:[%s2627_s4 + $0x48] sm:$0xff] }
  0xfd   :  { %v741_v55 = vadd.f32 %v740_v32, %v2256_v52  ;;  %1789 = vmatpush3.bf16.msra.mxu1 %v1786_v27  ;;  %v841_v35 = vsel %vm809_vm4, %v731_v24, %v825_v28  ;;  %vm1993_vm4 = vmmov 0  }
  0xfe   :  { %vm812_vm5 = vcmp.ge.f32.partialorder %v746_v31, 0.0  ;;  %v828_v36 = vmul.f32 0.01, %v746_v31  ;;  %v1790_v37 = vpack.c.bf16 %v842_v34, %v841_v35 }
  0xff   :  { %vm811_vm6 = vcmp.ge.f32.partialorder %v741_v55, 0.0  ;;  %v827_v54 = vmul.f32 0.01, %v741_v55  ;;  %v1581_v39 = vpop.f32.mrb[20].mxu0 }
 0x100   :  { %v756_v52 = vadd.f32 %v1581_v39, %v2264_v56  ;;  %1548 = vmatmul.mubr.f32.vlgmr.msra.gmra.mrb[0].mxu1 %v2311_v53  ;;  %v750_v40 = vpop.f32.mrb[21].mxu0  ;;  %1791 = vmatprep.subr.bf16.mxu1 %v1790_v37  ;;  %v844_v41 = vsel %vm812_vm5, %v746_v31, %v828_v36  ;;  %v2330_v56 = vld [vmem:[%s2627_s4 + $0x20] sm:$0xff]  ;;  %v70_v31 = vld [vmem:[%s2627_s4 + $0x58] sm:$0xff] }
 0x101   :  { %v751_v42 = vadd.f32 %v750_v40, %v2266_v57  ;;  %1793 = vmatpush3.bf16.msra.mxu1 %v1790_v37  ;;  %1550 = vmatprep.mubr.f32.mxu1 %v2316_v38  ;;  %v843_v44 = vsel %vm811_vm6, %v741_v55, %v827_v54 }
 0x102   :  { %vm814_vm7 = vcmp.ge.f32.partialorder %v756_v52, 0.0  ;;  %v830_v45 = vmul.f32 0.01, %v756_v52  ;;  %v1794_v47 = vpack.c.bf16 %v844_v41, %v843_v44 }
 0x103   :  { %vm813_vm8 = vcmp.ge.f32.partialorder %v751_v42, 0.0  ;;  %v829_v48 = vmul.f32 0.01, %v751_v42  ;;  %v1584_v57 = vpop.f32.mrb[22].mxu0 }
 0x104   :  { %v766_v50 = vadd.f32 %v1584_v57, %v2270_v63  ;;  %1551 = vmatmul.mubr.f32.gmra.mrb[2].mxu1 %v2325_v43  ;;  %v760_v58 = vpop.f32.mrb[23].mxu0  ;;  %1795 = vmatprep.subr.bf16.mxu1 %v1794_v47  ;;  %v846_v59 = vsel %vm814_vm7, %v756_v52, %v830_v45  ;;  %v2344_v63 = vld [vmem:[%s2627_s4 + $0x30] sm:$0xff]  ;;  %v72_v52 = vld [vmem:[%s2627_s4 + $0x68] sm:$0xff] }
 0x105   :  { %v761_v60 = vadd.f32 %v760_v58, %v2272_v2  ;;  %1797 = vmatpush3.bf16.msra.mxu1 %v1794_v47  ;;  %1553 = vmatprep.mubr.f32.mxu1 %v2330_v56  ;;  %v845_v62 = vsel %vm813_vm8, %v751_v42, %v829_v48 }
 0x106   :  { %vm816_vm9 = vcmp.ge.f32.partialorder %v766_v50, 0.0  ;;  %v832_v0 = vmul.f32 0.01, %v766_v50  ;;  %v1798_v1 = vpack.c.bf16 %v846_v59, %v845_v62 }
 0x107   :  { %vm815_vm10 = vcmp.ge.f32.partialorder %v761_v60, 0.0  ;;  %v831_v3 = vmul.f32 0.01, %v761_v60  ;;  %v1587_v2 = vpop.f32.mrb[24].mxu0 }
 0x108   :  { %v776_v4 = vadd.f32 %v1587_v2, %v2277_v15  ;;  %1554 = vmatmul.mubr.f32.gmra.mrb[4].mxu1 %v2339_v61  ;;  %v770_v5 = vpop.f32.mrb[25].mxu0  ;;  %1799 = vmatprep.subr.bf16.mxu1 %v1798_v1  ;;  %v848_v7 = vsel %vm816_vm9, %v766_v50, %v832_v0  ;;  %v2358_v15 = vld [vmem:[%s2627_s4 + $0x40] sm:$0xff] }
 0x109   :  { %v771_v8 = vadd.f32 %v770_v5, %v2280_v18  ;;  %1801 = vmatpush3.bf16.msra.mxu1 %v1798_v1  ;;  %1556 = vmatprep.mubr.f32.mxu1 %v2344_v63  ;;  %v847_v11 = vsel %vm815_vm10, %v761_v60, %v831_v3 }
 0x10a   :  { %vm818_vm11 = vcmp.ge.f32.partialorder %v776_v4, 0.0  ;;  %v834_v12 = vmul.f32 0.01, %v776_v4  ;;  %v1802_v13 = vpack.c.bf16 %v848_v7, %v847_v11 }
 0x10b   :  { %vm817_vm12 = vcmp.ge.f32.partialorder %v771_v8, 0.0  ;;  %v833_v14 = vmul.f32 0.01, %v771_v8  ;;  %v1590_v18 = vpop.f32.mrb[26].mxu0 }
 0x10c   :  { %v786_v16 = vadd.f32 %v1590_v18, %v2284_v30  ;;  %1557 = vmatmul.mubr.f32.gmra.mrb[6].mxu1 %v2353_v10  ;;  %v780_v17 = vpop.f32.mrb[27].mxu0  ;;  %1803 = vmatprep.subr.bf16.mxu1 %v1802_v13  ;;  %v850_v19 = vsel %vm818_vm11, %v776_v4, %v834_v12  ;;  %v69_v30 = vld [vmem:[%s2627_s4 + $0x50] sm:$0xff] }
 0x10d   :  { %v781_v20 = vadd.f32 %v780_v17, %v2286_v33  ;;  %1805 = vmatpush3.bf16.msra.mxu1 %v1802_v13  ;;  %1559 = vmatprep.mubr.f32.mxu1 %v2358_v15  ;;  %v849_v22 = vsel %vm817_vm12, %v771_v8, %v833_v14 }
 0x10e   :  { %vm820_vm13 = vcmp.ge.f32.partialorder %v786_v16, 0.0  ;;  %v836_v23 = vmul.f32 0.01, %v786_v16  ;;  %v1806_v24 = vpack.c.bf16 %v850_v19, %v849_v22 }
 0x10f   :  { %vm819_vm14 = vcmp.ge.f32.partialorder %v781_v20, 0.0  ;;  %v835_v25 = vmul.f32 0.01, %v781_v20  ;;  %v1593_v26 = vpop.f32.mrb[28].mxu0 }
 0x110   :  { %v796_v33 = vadd.f32 %v1593_v26, %v2291_v46  ;;  %1560 = vmatmul.mubr.f32.gmra.mrb[8].mxu1 %v68_v21  ;;  %v790_v27 = vpop.f32.mrb[29].mxu0  ;;  %1807 = vmatprep.subr.bf16.mxu1 %v1806_v24  ;;  %v852_v28 = vsel %vm820_vm13, %v786_v16, %v836_v23  ;;  %v71_v46 = vld [vmem:[%s2627_s4 + $0x60] sm:$0xff] }
 0x111   :  { %v791_v29 = vadd.f32 %v790_v27, %v2294_v49  ;;  %1809 = vmatpush3.bf16.msra.mxu1 %v1806_v24  ;;  %1562 = vmatprep.mubr.f32.mxu1 %v69_v30  ;;  %v851_v32 = vsel %vm819_vm14, %v781_v20, %v835_v25 }
 0x112   :  { %vm822_vm15 = vcmp.ge.f32.partialorder %v796_v33, 0.0  ;;  %v838_v34 = vmul.f32 0.01, %v796_v33  ;;  %v1810_v55 = vpack.c.bf16 %v852_v28, %v851_v32 }
 0x113   :  { %vm821_vm1 = vcmp.ge.f32.partialorder %v791_v29, 0.0  ;;  %v837_v35 = vmul.f32 0.01, %v791_v29  ;;  %v1596_v36 = vpop.f32.mrb[30].mxu0 }
 0x114   :  { %v806_v37 = vadd.f32 %v1596_v36, %v2298_v6  ;;  %1563 = vmatmul.mubr.f32.gmra.mrb[10].mxu1 %v70_v31  ;;  %v800_v49 = vpop.f32.mrb[31].mxu0  ;;  %1811 = vmatprep.subr.bf16.mxu1 %v1810_v55  ;;  %v854_v54 = vsel %vm822_vm15, %v796_v33, %v838_v34  ;;  %v73_v6 = vld [vmem:[%s2627_s4 + $0x70] sm:$0xff] }
 0x115   :  { %v801_v39 = vadd.f32 %v800_v49, %v2300_v9  ;;  %1813 = vmatpush3.bf16.msra.mxu1 %v1810_v55  ;;  %1565 = vmatprep.mubr.f32.mxu1 %v71_v46  ;;  %v853_v40 = vsel %vm821_vm1, %v791_v29, %v837_v35  ;;  %v74_v9 = vld [vmem:[%s2627_s4 + $0x78] sm:$0xff] }
 0x116   :  { %vm824_vm2 = vcmp.ge.f32.partialorder %v806_v37, 0.0  ;;  %v840_v41 = vmul.f32 0.01, %v806_v37  ;;  %v1814_v42 = vpack.c.bf16 %v854_v54, %v853_v40 }
 0x117   :  { %vm823_vm3 = vcmp.ge.f32.partialorder %v801_v39, 0.0  ;;  %v839_v44 = vmul.f32 0.01, %v801_v39 }
 0x118   :  { %1566 = vmatmul.mubr.f32.gmra.mrb[12].mxu1 %v72_v52  ;;  %1815 = vmatprep.subr.bf16.mxu1 %v1814_v42  ;;  %v856_v45 = vsel %vm824_vm2, %v806_v37, %v840_v41 }
 0x119   :  { %1817 = vmatpush3.bf16.msra.mxu1 %v1814_v42  ;;  %1568 = vmatprep.mubr.f32.mxu1 %v73_v6  ;;  %v855_v47 = vsel %vm823_vm3, %v801_v39, %v839_v44 }
 0x11a   :  { %v1818_v48 = vpack.c.bf16 %v856_v45, %v855_v47 }
 0x11c   :  { %1569 = vmatmul.mubr.f32.gmra.mrb[14].mxu1 %v74_v9  ;;  %1819 = vmatprep.subr.bf16.mxu1 %v1818_v48 }
 0x11d   :  { %1821 = vmatpush3.bf16.msra.mxu1 %v1818_v48  ;;  %1629 = vmatprep.mubr.f32.mxu1 %v2253_v51  ;;  %v1992_v51 = vmov 0.0|0.0  }
 0x11e   :  { %1846 = vmatprep.subr.bf16.mxu1 %v1992_v51  ;;  %1822 = vmatprep.subr.bf16.mxu0 %v1992_v51 }
 0x120   :  { %1630 = vmatmul.mubr.f32.vlgmr.msra.gmra.mrb[16].mxu1 %v2311_v53  ;;  %v1994_v53 = vmov 0.0  }
 0x121   :  { %1632 = vmatprep.mubr.f32.mxu1 %v2316_v38  ;;  %1685 = vmatprep.mubr.msk.f32.mxu0 %vm1993_vm4, %v1994_v53  ;;  %v2404_v38 = vpop.permute.xlu1 %426 }
 0x124   :  { %1633 = vmatmul.mubr.f32.gmra.mrb[18].mxu1 %v2325_v43  ;;  %v2406_v43 = vpop.permute.xlu0 %421 }
 0x125   :  { %1635 = vmatprep.mubr.f32.mxu1 %v2330_v56  ;;  %v2408_v56 = vpop.permute.xlu1 %436 }
 0x128   :  { %1636 = vmatmul.mubr.f32.gmra.mrb[20].mxu1 %v2339_v61  ;;  %v2410_v57 = vpop.permute.xlu0 %431 }
 0x129   :  { %1638 = vmatprep.mubr.f32.mxu1 %v2344_v63  ;;  %v2412_v50 = vpop.permute.xlu1 %446 }
 0x12c   :  { %1639 = vmatmul.mubr.f32.gmra.mrb[22].mxu1 %v2353_v10  ;;  %v2414_v58 = vpop.permute.xlu0 %441 }
 0x12d   :  { %1641 = vmatprep.mubr.f32.mxu1 %v2358_v15  ;;  %v2418_v0 = vpop.permute.xlu1 %456 }
 0x130   :  { %1642 = vmatmul.mubr.f32.gmra.mrb[24].mxu1 %v68_v21  ;;  %v2420_v63 = vpop.permute.xlu0 %451 }
 0x131   :  { %1644 = vmatprep.mubr.f32.mxu1 %v69_v30  ;;  %v2425_v10 = vpop.permute.xlu1 %466 }
 0x134   :  { %1645 = vmatmul.mubr.f32.gmra.mrb[26].mxu1 %v70_v31  ;;  %v2428_v12 = vpop.permute.xlu0 %461 }
 0x135   :  { %1647 = vmatprep.mubr.f32.mxu1 %v71_v46  ;;  %v2440_v21 = vpop.permute.xlu1 %476 }
 0x138   :  { %1648 = vmatmul.mubr.f32.gmra.mrb[28].mxu1 %v72_v52  ;;  %v2444_v24 = vpop.permute.xlu0 %471 }
 0x139   :  { %1650 = vmatprep.mubr.f32.mxu1 %v73_v6  ;;  %v2460_v36 = vpop.permute.xlu1 %486 }
 0x13c   :  { %1651 = vmatmul.mubr.f32.gmra.mrb[30].mxu1 %v74_v9  ;;  %v2465_v54 = vpop.permute.xlu0 %481 }
 0x13d   :  { %1720 = vmatprep.mubr.msk.f32.mxu1 %vm1993_vm4, %v1994_v53  ;;  %v2480_v48 = vpop.permute.xlu1 %496 }
 0x1d3   :  { %v1549_v59 = vpop.f32.mrb[0].mxu1 }
 0x1d4   :  { %v571_v60 = vadd.f32 %v1549_v59, %v2404_v38  ;;  %v565_v61 = vpop.f32.mrb[1].mxu1 }
 0x1d5   :  { %v566_v62 = vadd.f32 %v565_v61, %v2406_v43  ;;  %v2485_v61 = vpop.permute.xlu0 %491 }
 0x1d6   :  { %1901 = vtanh.f32 %v571_v60 }
 0x1d7   :  { %1903 = vtanh.f32 %v566_v62  ;;  %v1552_v1 = vpop.f32.mrb[2].mxu1 }
 0x1d8   :  { %v581_v3 = vadd.f32 %v1552_v1, %v2408_v56  ;;  %v575_v2 = vpop.f32.mrb[3].mxu1 }
 0x1d9   :  { %v576_v4 = vadd.f32 %v575_v2, %v2410_v57 }
 0x1da   :  { %1905 = vtanh.f32 %v581_v3 }
 0x1db   :  { %1907 = vtanh.f32 %v576_v4  ;;  %v1555_v5 = vpop.f32.mrb[4].mxu1 }
 0x1dc   :  { %v591_v7 = vadd.f32 %v1555_v5, %v2412_v50  ;;  %v585_v8 = vpop.f32.mrb[5].mxu1 }
 0x1dd   :  { %v586_v11 = vadd.f32 %v585_v8, %v2414_v58 }
 0x1de   :  { %1909 = vtanh.f32 %v591_v7 }
 0x1df   :  { %1911 = vtanh.f32 %v586_v11  ;;  %v1558_v13 = vpop.f32.mrb[6].mxu1 }
 0x1e0   :  { %v2430_v15 = vpop.eup %1901  ;;  %v601_v14 = vadd.f32 %v1558_v13, %v2418_v0  ;;  %v595_v18 = vpop.f32.mrb[7].mxu1 }
 0x1e1   :  { %v2433_v16 = vpop.eup %1903  ;;  %v596_v17 = vadd.f32 %v595_v18, %v2420_v63  ;;  %v1105_v19 = vmul.f32 %v2430_v15, %v2430_v15 }
 0x1e2   :  { %1913 = vtanh.f32 %v601_v14  ;;  %v1104_v20 = vmul.f32 %v2433_v16, %v2433_v16 }
 0x1e3   :  { %1915 = vtanh.f32 %v596_v17  ;;  %v1561_v22 = vpop.f32.mrb[8].mxu1 }
 0x1e4   :  { %v2442_v23 = vpop.eup %1905  ;;  %v611_v30 = vadd.f32 %v1561_v22, %v2425_v10  ;;  %v605_v25 = vpop.f32.mrb[9].mxu1  ;;  %v1847_v26 = vpack.c.bf16 %v1105_v19, %v1104_v20 }
 0x1e5   :  { %v2447_v33 = vpop.eup %1907  ;;  %v606_v27 = vadd.f32 %v605_v25, %v2428_v12  ;;  %v1107_v28 = vmul.f32 %v2442_v23, %v2442_v23 }
 0x1e6   :  { %1917 = vtanh.f32 %v611_v30  ;;  %1848 = vmatpush3.bf16.msra.mxu1 %v1847_v26  ;;  %v1106_v29 = vmul.f32 %v2447_v33, %v2447_v33 }
 0x1e7   :  { %1919 = vtanh.f32 %v606_v27  ;;  %v1564_v31 = vpop.f32.mrb[10].mxu1  ;;  %1849 = vmatprep.subr.bf16.mxu1 %v1992_v51 }
 0x1e8   :  { %v2455_v32 = vpop.eup %1909  ;;  %v621_v34 = vadd.f32 %v1564_v31, %v2440_v21  ;;  %v615_v55 = vpop.f32.mrb[11].mxu1  ;;  %v1850_v46 = vpack.c.bf16 %v1107_v28, %v1106_v29 }
 0x1e9   :  { %v2458_v35 = vpop.eup %1911  ;;  %v616_v37 = vadd.f32 %v615_v55, %v2444_v24  ;;  %v1109_v49 = vmul.f32 %v2455_v32, %v2455_v32 }
 0x1ea   :  { %1921 = vtanh.f32 %v621_v34  ;;  %1851 = vmatpush3.bf16.msra.mxu1 %v1850_v46  ;;  %v1108_v39 = vmul.f32 %v2458_v35, %v2458_v35 }
 0x1eb   :  { %1923 = vtanh.f32 %v616_v37  ;;  %v1567_v52 = vpop.f32.mrb[12].mxu1  ;;  %1852 = vmatprep.subr.bf16.mxu1 %v1992_v51 }
 0x1ec   :  { %v2470_v40 = vpop.eup %1913  ;;  %v631_v41 = vadd.f32 %v1567_v52, %v2460_v36  ;;  %v625_v42 = vpop.f32.mrb[13].mxu1  ;;  %v1853_v6 = vpack.c.bf16 %v1109_v49, %v1108_v39 }
 0x1ed   :  { %v2473_v44 = vpop.eup %1915  ;;  %v626_v45 = vadd.f32 %v625_v42, %v2465_v54  ;;  %v1111_v9 = vmul.f32 %v2470_v40, %v2470_v40 }
 0x1ee   :  { %1925 = vtanh.f32 %v631_v41  ;;  %1854 = vmatpush3.bf16.msra.mxu1 %v1853_v6  ;;  %v1110_v47 = vmul.f32 %v2473_v44, %v2473_v44 }
 0x1ef   :  { %1927 = vtanh.f32 %v626_v45  ;;  %v1570_v59 = vpop.f32.mrb[14].mxu1  ;;  %1855 = vmatprep.subr.bf16.mxu1 %v1992_v51 }
 0x1f0   :  { %v2483_v60 = vpop.eup %1917  ;;  %v641_v62 = vadd.f32 %v1570_v59, %v2480_v48  ;;  %v635_v1 = vpop.f32.mrb[15].mxu1  ;;  %v1856_v3 = vpack.c.bf16 %v1111_v9, %v1110_v47 }
 0x1f1   :  { %v2488_v2 = vpop.eup %1919  ;;  %v636_v4 = vadd.f32 %v635_v1, %v2485_v61  ;;  %v1113_v5 = vmul.f32 %v2483_v60, %v2483_v60 }
 0x1f2   :  { %1929 = vtanh.f32 %v641_v62  ;;  %1857 = vmatpush3.bf16.msra.mxu1 %v1856_v3  ;;  %v1112_v7 = vmul.f32 %v2488_v2, %v2488_v2 }
 0x1f3   :  { %1931 = vtanh.f32 %v636_v4  ;;  %v1631_v8 = vpop.f32.mrb[16].mxu1  ;;  %1858 = vmatprep.subr.bf16.mxu1 %v1992_v51 }
 0x1f4   :  { %v2496_v11 = vpop.eup %1921  ;;  %v929_v13 = vadd.f32 %v1631_v8, %v2404_v38  ;;  %v923_v14 = vpop.f32.mrb[17].mxu1  ;;  %v1859_v18 = vpack.c.bf16 %v1113_v5, %v1112_v7 }
 0x1f5   :  { %v2499_v17 = vpop.eup %1923  ;;  %v924_v19 = vadd.f32 %v923_v14, %v2406_v43  ;;  %v1115_v20 = vmul.f32 %v2496_v11, %v2496_v11 }
 0x1f6   :  { %1933 = vtanh.f32 %v929_v13  ;;  %1860 = vmatpush3.bf16.msra.mxu1 %v1859_v18  ;;  %v1114_v22 = vmul.f32 %v2499_v17, %v2499_v17 }
 0x1f7   :  { %1935 = vtanh.f32 %v924_v19  ;;  %v1634_v30 = vpop.f32.mrb[18].mxu1  ;;  %1861 = vmatprep.subr.bf16.mxu1 %v1992_v51 }
 0x1f8   :  { %v2507_v25 = vpop.eup %1925  ;;  %v939_v38 = vadd.f32 %v1634_v30, %v2408_v56  ;;  %v933_v26 = vpop.f32.mrb[19].mxu1  ;;  %v1862_v27 = vpack.c.bf16 %v1115_v20, %v1114_v22 }
 0x1f9   :  { %v2510_v28 = vpop.eup %1927  ;;  %v934_v43 = vadd.f32 %v933_v26, %v2410_v57  ;;  %v1117_v29 = vmul.f32 %v2507_v25, %v2507_v25 }
 0x1fa   :  { %1937 = vtanh.f32 %v939_v38  ;;  %1863 = vmatpush3.bf16.msra.mxu1 %v1862_v27  ;;  %v1116_v31 = vmul.f32 %v2510_v28, %v2510_v28 }
 0x1fb   :  { %1939 = vtanh.f32 %v934_v43  ;;  %v1637_v34 = vpop.f32.mrb[20].mxu1  ;;  %1864 = vmatprep.subr.bf16.mxu1 %v1992_v51 }
 0x1fc   :  { %v2518_v55 = vpop.eup %1929  ;;  %v949_v56 = vadd.f32 %v1637_v34, %v2412_v50  ;;  %v943_v46 = vpop.f32.mrb[21].mxu1  ;;  %v1865_v37 = vpack.c.bf16 %v1117_v29, %v1116_v31 }
 0x1fd   :  { %v2521_v49 = vpop.eup %1931  ;;  %v944_v57 = vadd.f32 %v943_v46, %v2414_v58  ;;  %v1119_v39 = vmul.f32 %v2518_v55, %v2518_v55 }
 0x1fe   :  { %1941 = vtanh.f32 %v949_v56  ;;  %1866 = vmatpush3.bf16.msra.mxu1 %v1865_v37  ;;  %v1118_v52 = vmul.f32 %v2521_v49, %v2521_v49 }
 0x1ff   :  { %1943 = vtanh.f32 %v944_v57  ;;  %v1640_v41 = vpop.f32.mrb[22].mxu1  ;;  %1867 = vmatprep.subr.bf16.mxu1 %v1992_v51 }
 0x200   :  { %v1934_v42 = vpop.eup %1933  ;;  %v959_v50 = vadd.f32 %v1640_v41, %v2418_v0  ;;  %v953_v6 = vpop.f32.mrb[23].mxu1  ;;  %v1868_v45 = vpack.c.bf16 %v1119_v39, %v1118_v52 }
 0x201   :  { %v1936_v9 = vpop.eup %1935  ;;  %v954_v58 = vadd.f32 %v953_v6, %v2420_v63  ;;  %v1019_v47 = vmul.f32 %v1934_v42, %v2430_v15  ;;  %v2532_v59 = vmul.f32 %v1934_v42, %v1934_v42  ;;  %v2541_v63 = vld [vmem:[%s2629_s6] sm:$0xf]  ;;  %s1995_s6 = smov [#allocation2]  }
 0x202   :  { %1945 = vtanh.f32 %v959_v50  ;;  %1869 = vmatpush3.bf16.msra.mxu1 %v1868_v45  ;;  %v1018_v62 = vmul.f32 %v1936_v9, %v2433_v16  ;;  %v2535_v1 = vmul.f32 %v1936_v9, %v1936_v9  ;;  %s1298_s24 = sshll.u32 %s1995_s6, 4  ;;  %s1299_s24 = int_to_ptr.vmem [resolvable:$true] %s1298_s24 }
 0x203   :  { %1947 = vtanh.f32 %v954_v58  ;;  %v1643_v3 = vpop.f32.mrb[24].mxu1  ;;  %s1967_s25 = scalar_lea.vmem %s1299_s24, 16  ;;  %s1971_s26 = scalar_lea.vmem %s1299_s24, 32 }
 0x204   :  { %v1938_v4 = vpop.eup %1937  ;;  %v969_v0 = vadd.f32 %v1643_v3, %v2425_v10  ;;  %v963_v5 = vpop.f32.mrb[25].mxu1  ;;  %v1823_v7 = vpack.c.bf16 %v1019_v47, %v1018_v62  ;;  %v1871_v15 = vpack.c.bf16 %v2532_v59, %v2535_v1  ;;  %p1968_p0 = scmp.ne.s32.totalorder %s1299_s24, %s1967_s25  ;;  %p1972_p1 = scmp.lt.s32.totalorder %s1299_s24, %s1299_s24 }
 0x205   :  { %v1940_v8 = vpop.eup %1939  ;;  %v964_v16 = vadd.f32 %v963_v5, %v2428_v12  ;;  %v1021_v13 = vmul.f32 %v1938_v4, %v2442_v23  ;;  %v2547_v14 = vmul.f32 %v1938_v4, %v1938_v4  ;;  %1721 = vmatmul.mubr.f32.vlgmr.msra.gmra.mrb[32].mxu1 %v2541_v63  ;;  %p1973_p2 = scmp.lt.s32.totalorder %s1971_s26, %s1967_s25 }
 0x206   :  { %1949 = vtanh.f32 %v969_v0  ;;  %1824 = vmatpush3.bf16.msra.mxu0 %v1823_v7  ;;  %v1020_v10 = vmul.f32 %v1940_v8, %v2447_v33  ;;  %v2551_v18 = vmul.f32 %v1940_v8, %v1940_v8 }
 0x207   :  { %1951 = vtanh.f32 %v964_v16  ;;  %v1646_v19 = vpop.f32.mrb[26].mxu1  ;;  %1825 = vmatprep.subr.bf16.mxu0 %v1992_v51  ;;  %p1974_p3 = por %p1973_p2, %p1972_p1 }
 0x208   :  { %v1942_v20 = vpop.eup %1941  ;;  %v979_v22 = vadd.f32 %v1646_v19, %v2440_v21  ;;  %v973_v12 = vpop.f32.mrb[27].mxu1  ;;  %v1826_v30 = vpack.c.bf16 %v1021_v13, %v1020_v10  ;;  %v1874_v23 = vpack.c.bf16 %v2547_v14, %v2551_v18 }
 0x209   :  { %v1944_v38 = vpop.eup %1943  ;;  %v974_v26 = vadd.f32 %v973_v12, %v2444_v24  ;;  %v1023_v27 = vmul.f32 %v1942_v20, %v2455_v32  ;;  %v2559_v33 = vmul.f32 %v1942_v20, %v1942_v20  ;;  %p1975_p4 = pnand %p1974_p3, %p1968_p0 }
 0x20a   :  { %1953 = vtanh.f32 %v979_v22  ;;  %1827 = vmatpush3.bf16.msra.mxu0 %v1826_v30  ;;  %v1022_v43 = vmul.f32 %v1944_v38, %v2458_v35  ;;  %v2562_v29 = vmul.f32 %v1944_v38, %v1944_v38 }
 0x20b   :  { %1955 = vtanh.f32 %v974_v26  ;;  %v1649_v21 = vpop.f32.mrb[28].mxu1  ;;  %1828 = vmatprep.subr.bf16.mxu0 %v1992_v51 }
 0x20c   :  { %v1946_v31 = vpop.eup %1945  ;;  %v989_v34 = vadd.f32 %v1649_v21, %v2460_v36  ;;  %v983_v56 = vpop.f32.mrb[29].mxu1  ;;  %v1829_v46 = vpack.c.bf16 %v1023_v27, %v1022_v43  ;;  %v1877_v24 = vpack.c.bf16 %v2559_v33, %v2562_v29 }
 0x20d   :  { %v1948_v32 = vpop.eup %1947  ;;  %v984_v37 = vadd.f32 %v983_v56, %v2465_v54  ;;  %v1025_v57 = vmul.f32 %v1946_v31, %v2470_v40  ;;  %v2570_v35 = vmul.f32 %v1946_v31, %v1946_v31 }
 0x20e   :  { %1957 = vtanh.f32 %v989_v34  ;;  %1830 = vmatpush3.bf16.msra.mxu0 %v1829_v46  ;;  %v1024_v39 = vmul.f32 %v1948_v32, %v2473_v44  ;;  %v1196_v52 = vmul.f32 %v1948_v32, %v1948_v32 }
 0x20f   :  { %1959 = vtanh.f32 %v984_v37  ;;  %v1652_v41 = vpop.f32.mrb[30].mxu1  ;;  %1831 = vmatprep.subr.bf16.mxu0 %v1992_v51 }
 0x210   :  { %v1950_v36 = vpop.eup %1949  ;;  %v999_v42 = vadd.f32 %v1652_v41, %v2480_v48  ;;  %v993_v50 = vpop.f32.mrb[31].mxu1  ;;  %v1832_v6 = vpack.c.bf16 %v1025_v57, %v1024_v39  ;;  %v1880_v54 = vpack.c.bf16 %v2570_v35, %v1196_v52 }
 0x211   :  { %v1952_v45 = vpop.eup %1951  ;;  %v994_v40 = vadd.f32 %v993_v50, %v2485_v61  ;;  %v1027_v9 = vmul.f32 %v1950_v36, %v2483_v60  ;;  %v1199_v58 = vmul.f32 %v1950_v36, %v1950_v36 }
 0x212   :  { %1961 = vtanh.f32 %v999_v42  ;;  %1833 = vmatpush3.bf16.msra.mxu0 %v1832_v6  ;;  %v1026_v44 = vmul.f32 %v1952_v45, %v2488_v2  ;;  %v1198_v47 = vmul.f32 %v1952_v45, %v1952_v45 }
 0x213   :  { %1963 = vtanh.f32 %v994_v40  ;;  %1834 = vmatprep.subr.bf16.mxu0 %v1992_v51 }
 0x214   :  { %v1954_v62 = vpop.eup %1953  ;;  %v1835_v48 = vpack.c.bf16 %v1027_v9, %v1026_v44  ;;  %v1883_v3 = vpack.c.bf16 %v1199_v58, %v1198_v47 }
 0x215   :  { %v1956_v4 = vpop.eup %1955  ;;  %v1029_v0 = vmul.f32 %v1954_v62, %v2496_v11  ;;  %v1201_v5 = vmul.f32 %v1954_v62, %v1954_v62 }
 0x216   :  { %1836 = vmatpush3.bf16.msra.mxu0 %v1835_v48  ;;  %v1028_v61 = vmul.f32 %v1956_v4, %v2499_v17  ;;  %v1200_v60 = vmul.f32 %v1956_v4, %v1956_v4 }
 0x217   :  { %1837 = vmatprep.subr.bf16.mxu0 %v1992_v51 }
 0x218   :  { %v1958_v7 = vpop.eup %1957  ;;  %v1838_v8 = vpack.c.bf16 %v1029_v0, %v1028_v61  ;;  %v1886_v2 = vpack.c.bf16 %v1201_v5, %v1200_v60 }
 0x219   :  { %v1960_v16 = vpop.eup %1959  ;;  %v1031_v13 = vmul.f32 %v1958_v7, %v2507_v25  ;;  %v1203_v10 = vmul.f32 %v1958_v7, %v1958_v7 }
 0x21a   :  { %1839 = vmatpush3.bf16.msra.mxu0 %v1838_v8  ;;  %v1030_v19 = vmul.f32 %v1960_v16, %v2510_v28  ;;  %v1202_v20 = vmul.f32 %v1960_v16, %v1960_v16 }
 0x21b   :  { %1840 = vmatprep.subr.bf16.mxu0 %v1992_v51 }
 0x21c   :  { %v1962_v11 = vpop.eup %1961  ;;  %v1841_v22 = vpack.c.bf16 %v1031_v13, %v1030_v19  ;;  %v1889_v12 = vpack.c.bf16 %v1203_v10, %v1202_v20 }
 0x21d   :  { %v1964_v17 = vpop.eup %1963  ;;  %v1033_v30 = vmul.f32 %v1962_v11, %v2518_v55  ;;  %v1205_v38 = vmul.f32 %v1962_v11, %v1962_v11 }
 0x21e   :  { %1842 = vmatpush3.bf16.msra.mxu0 %v1841_v22  ;;  %v1032_v26 = vmul.f32 %v1964_v17, %v2521_v49  ;;  %v1204_v27 = vmul.f32 %v1964_v17, %v1964_v17 }
 0x21f   :  { %1843 = vmatprep.subr.bf16.mxu0 %v1992_v51 }
 0x220   :  { %v1844_v25 = vpack.c.bf16 %v1033_v30, %v1032_v26  ;;  %v1892_v43 = vpack.c.bf16 %v1205_v38, %v1204_v27 }
 0x222   :  { %1845 = vmatpush3.bf16.msra.mxu0 %v1844_v25 }
 0x223   :  { %1870 = vmatprep.subr.bf16.mxu0 %v1992_v51 }
 0x225   :  { %1686 = vmatmul.mubr.f32.vlgmr.msra.gmra.mrb[32].mxu0 %v2541_v63 }
 0x226   :  { %1872 = vmatpush3.bf16.msra.mxu0 %v1871_v15  ;;  %1755 = vmatprep.mubr.msk.f32.mxu0 %vm1993_vm4, %v1994_v53 }
 0x227   :  { %1873 = vmatprep.subr.bf16.mxu0 %v1992_v51 }
 0x22a   :  { %1875 = vmatpush3.bf16.msra.mxu0 %v1874_v23 }
 0x22b   :  { %1876 = vmatprep.subr.bf16.mxu0 %v1992_v51 }
 0x22e   :  { %1878 = vmatpush3.bf16.msra.mxu0 %v1877_v24 }
 0x22f   :  { %1879 = vmatprep.subr.bf16.mxu0 %v1992_v51 }
 0x232   :  { %1881 = vmatpush3.bf16.msra.mxu0 %v1880_v54 }
 0x233   :  { %1882 = vmatprep.subr.bf16.mxu0 %v1992_v51 }
 0x236   :  { %1884 = vmatpush3.bf16.msra.mxu0 %v1883_v3 }
 0x237   :  { %1885 = vmatprep.subr.bf16.mxu0 %v1992_v51 }
 0x23a   :  { %1887 = vmatpush3.bf16.msra.mxu0 %v1886_v2 }
 0x23b   :  { %1888 = vmatprep.subr.bf16.mxu0 %v1992_v51 }
 0x23e   :  { %1890 = vmatpush3.bf16.msra.mxu0 %v1889_v12 }
 0x23f   :  { %1891 = vmatprep.subr.bf16.mxu0 %v1992_v51 }
 0x242   :  { %1893 = vmatpush3.bf16.msra.mxu0 %v1892_v43 }
 0x245   :  { %1756 = vmatmul.mubr.f32.vlgmr.msra.gmra.mrb[34].mxu0 %v2541_v63 }
 0x2d8   :  { %v1186_v53 = vpop.f32.mrb[32].mxu1 }
 0x2d9   :  { %v1722_v28 = vpop.f32.mrb[33].mxu1 }
 0x2f8   :  { %v1100_v55 = vpop.f32.mrb[32].mxu0 }
 0x2f9   :  { %v1687_v49 = vpop.f32.mrb[33].mxu0 }
 0x318   :  { %v1272_v59 = vpop.f32.mrb[34].mxu0 }
 0x319   :  { %v1276_v1 = vmul.f32 %v1272_v59, %v1186_v53  ;;  %v1757_v15 = vpop.f32.mrb[35].mxu0 }
 0x31b   :  { %v1277_v14 = vmax.f32 %v1276_v1, 1e-16 }
 0x31d   :  { %1965 = vrsqrt.f32 %v1277_v14 }
 0x327   :  { %v1966_v18 = vpop.eup %1965 }
 0x328   :  { %v1279_v23 = vmul.f32 %v1966_v18, %v1100_v55 }
 0x32a   :  { %v1280_v33 = vadd.f32 1.0, %v1279_v23 }
 0x32c   :  { %v1281_v29 = vmul.f32 0.5, %v1280_v33 }
 0x32e   :  { %v1282_v21 = vsel %vm222_vm0, %v1281_v29, 0.0 }
 0x32f   :  { %v1283_v31 = vrot.slane %v1282_v21, 4 }
 0x331   :  { %v1284_v51 = vadd.f32 %v1283_v31, %v1282_v21 }
 0x333   :  { %v1285_v34 = vrot.slane %v1284_v51, 2 }
 0x335   :  { %v1286_v56 = vadd.f32 %v1285_v34, %v1284_v51 }
 0x337   :  { %v1287_v63 = vrot.slane %v1286_v56, 1 }
 0x339   :  { %v1288_v46 = vadd.f32 %v1287_v63, %v1286_v56 }
 0x33b   :  { %v1290_v24 = vmul.f32 0.25, %v1288_v46 }
 0x33d   :  { %1291 = vst [vmem:[#allocation2] sm:$0x1] %v1290_v24 }
 0x33e   :  { %1978 = shalt.err (!%p1975_p4)
}
 0x33f   :  { %s1979_s29 = scalar_lea.hbm %s2630_s7, 16 }
 0x340   :  { %p1980_p5 = scmp.ne.s32.totalorder %s2630_s7, %s1979_s29  ;;  %p1983_p6 = scmp.lt.u32.totalorder %s1979_s29, %s2630_s7 }
 0x342   :  { %p1985_p7 = pnand %p1983_p6, %p1980_p5 }
 0x344   :  { %1988 = shalt.err (!%p1985_p7)
}
 0x345   :  { %1301 = dma.vmem_to_hbm [thread:$0]  %s1299_s24, 16, %s2630_s7, [#allocation3]  }
 0x346   :  { %1989 = dma.done.wait [#allocation3], 16  }
 0x347   :  { %1990 = vsyncadd [#allocation3], 4294967280 }
 0x348   :  { %1305 = vsyncpa [#allocation3], 1 }

</bundles_post_ra>
